<compile_context>
chip_gen: v5e
topology: v5e:2x2
jax: 0.10.0
libtpu: 0.0.40
codegen_flags: <defaults>
</compile_context>

<pallas_src>
import jax
import jax.numpy as jnp
from jax.experimental import pallas as pl
from jax.experimental.pallas import tpu as pltpu


def _fused_mpnn_gru_kernel(m_ref, b_ref, g_ref, h_ref,
                           wih_ref, whh_ref, bih_ref, bhh_ref, exp_ref,
                           out_ref):
    """One grid step = NBt batch elements, all buckets fused.

    m_ref  : (NBt, Vs, Vd, MS)   messages, original layout (f32)
    b_ref  : (NBt, Vs, Vd, B)    bucket one-hot            (f32)
    g_ref  : (NBt, Vs, Vd)       adjacency                 (f32)
    h_ref  : (NBt, Vd, HS)       hidden state              (f32)
    wih_ref: (MS, 3*B*HS)        stacked input weights, gate-major/bucket/unit cols (compute dt)
    whh_ref: (HS, 3*B*HS)        stacked hidden weights, same column layout          (compute dt)
    bih_ref: (1, 3*B*HS)         input biases  (f32)
    bhh_ref: (1, 3*B*HS)         hidden biases (f32)
    exp_ref: (B, 3*B*HS)         0/1 bucket -> gate-major-column expansion matrix (f32)
    out_ref: (NBt, Vd, B*HS)     per-bucket GRU outputs (f32, lane-dense)
    """
    NBt, Vs, Vd, MS = m_ref.shape
    B = b_ref.shape[-1]
    HS = h_ref.shape[-1]
    G = B * HS                      # per-gate lane width (128 for B=4, HS=32)
    G3 = 3 * G
    E = NBt * Vs * Vd               # number of edges in this block (128 at the demo shape)
    M = NBt * Vd                    # number of destination nodes in this block

    # --- per-edge input-gate contributions: every bucket's weights on every edge (one MXU op) --
    m_flat = m_ref[...].reshape(E, MS).astype(wih_ref.dtype)
    p = jnp.dot(m_flat, wih_ref[...], preferred_element_type=jnp.float32)     # (E, 3*B*HS)
    p = p.reshape(NBt, Vs, Vd, G3)

    # --- bucket/adjacency mask (exact `== 1` semantics), expanded to gate-major columns --------
    sel = jnp.where(b_ref[...] == 1.0, g_ref[...][..., None], 0.0)            # (NBt,Vs,Vd,B) f32
    sel_cols = jnp.dot(sel.reshape(E, B), exp_ref[...],
                       preferred_element_type=jnp.float32)                    # (E, 3*B*HS)
    sel_cols = sel_cols.reshape(NBt, Vs, Vd, G3)

    # --- mask + aggregate over source nodes (VPU multiply + reduce; f32 accumulation) ----------
    gi = jnp.sum(p * sel_cols, axis=1).reshape(M, G3) + bih_ref[...]          # (M, 3*B*HS)

    # --- hidden gates, hoisted across buckets (one matmul) -------------------------------------
    h2 = h_ref[...].reshape(M, HS)
    gh = jnp.dot(h2.astype(whh_ref.dtype), whh_ref[...],
                 preferred_element_type=jnp.float32) + bhh_ref[...]           # (M, 3*B*HS)

    # PyTorch GRU gate order (r, z, n); slices sit on B*HS (=128) lane boundaries.
    r = jax.nn.sigmoid(gi[:, :G] + gh[:, :G])
    z = jax.nn.sigmoid(gi[:, G:2 * G] + gh[:, G:2 * G])
    n = jnp.tanh(gi[:, 2 * G:] + r * gh[:, 2 * G:])

    # h replicated across buckets via broadcast (no B-way lane concatenate).
    h_rep = jnp.broadcast_to(h2[:, None, :], (M, B, HS)).reshape(M, G)        # (M, B*HS) f32
    h_new = n + z * (h_rep - n)                                               # (1-z)*n + z*h

    out_ref[...] = h_new.reshape(NBt, Vd, G)                                  # lane-dense store


def specialised_update_option1(g, m, b, h, w_ih, w_hh, b_ih, b_hh,
                               *, compute_dtype=jnp.bfloat16, nbt=None):
    """
    g: (NB,V,V)  m: (NB,V,V,MS)  b: (NB,V,V,B)  h: (NB,V,HS)
    w_ih: (B, 3*HS, MS)  w_hh: (B, 3*HS, HS)  b_ih/b_hh: (B, 3*HS)
    (parameters of self.u[1..B]; u[0] is unused by the forward pass)
    """
    NB, Vs, Vd, MS = m.shape
    HS = h.shape[-1]
    B = b.shape[-1]
    G = B * HS
    G3 = 3 * G
    cd = compute_dtype

    # Batch elements per grid step: largest divisor of NB keeping <= ~1024 edge rows per step
    # (fills MXU sublanes and amortizes per-step overhead).  Smaller nbt gives >=2 grid steps
    # for 2-TC (v7x) sharding on larger batches.
    if nbt is None:
        nbt = 1
        for d in range(1, NB + 1):
            if NB % d == 0 and d * Vs * Vd <= 1024:
                nbt = d
    assert NB % nbt == 0, "nbt must divide the batch size"

    # --- tiny parameter prep (columns: gate-major, then bucket, then unit) ---------------------
    wih_all = jnp.transpose(w_ih.reshape(B, 3, HS, MS), (3, 1, 0, 2)).reshape(MS, G3).astype(cd)
    whh_all = jnp.transpose(w_hh.reshape(B, 3, HS, HS), (3, 1, 0, 2)).reshape(HS, G3).astype(cd)
    bih_all = jnp.transpose(b_ih.reshape(B, 3, HS), (1, 0, 2)).reshape(1, G3).astype(jnp.float32)
    bhh_all = jnp.transpose(b_hh.reshape(B, 3, HS), (1, 0, 2)).reshape(1, G3).astype(jnp.float32)

    # 0/1 matrix expanding a (B,) bucket mask onto the 3*B*HS gate-major columns.
    exp1 = jnp.repeat(jnp.eye(B, dtype=jnp.float32), HS, axis=1)               # (B, B*HS)
    exp3 = jnp.tile(exp1, (1, 3))                                              # (B, 3*B*HS)

    grid = (NB // nbt,)

    out = pl.pallas_call(
        _fused_mpnn_gru_kernel,
        out_shape=jax.ShapeDtypeStruct((NB, Vd, G), jnp.float32),
        grid_spec=pltpu.PrefetchScalarGridSpec(
            num_scalar_prefetch=0,
            grid=grid,
            in_specs=[
                pl.BlockSpec((nbt, Vs, Vd, MS), lambda i: (i, 0, 0, 0)),   # m (original layout)
                pl.BlockSpec((nbt, Vs, Vd, B), lambda i: (i, 0, 0, 0)),    # b
                pl.BlockSpec((nbt, Vs, Vd), lambda i: (i, 0, 0)),          # g
                pl.BlockSpec((nbt, Vd, HS), lambda i: (i, 0, 0)),          # h
                pl.BlockSpec((MS, G3), lambda i: (0, 0)),                  # wih_all (grid-invariant)
                pl.BlockSpec((HS, G3), lambda i: (0, 0)),                  # whh_all (grid-invariant)
                pl.BlockSpec((1, G3), lambda i: (0, 0)),                   # b_ih
                pl.BlockSpec((1, G3), lambda i: (0, 0)),                   # b_hh
                pl.BlockSpec((B, G3), lambda i: (0, 0)),                   # mask expansion matrix
            ],
            out_specs=pl.BlockSpec((nbt, Vd, G), lambda i: (i, 0, 0)),
        ),
        compiler_params=pltpu.CompilerParams(
            dimension_semantics=("parallel",),      # independent batch blocks
            vmem_limit_bytes=32 * 1024 * 1024),     # valid on all parts; fits v7x's 64 MiB VMEM
    )(m.astype(jnp.float32), b.astype(jnp.float32), g.astype(jnp.float32),
      h.astype(jnp.float32), wih_all, whh_all, bih_all, bhh_all, exp3)

    # Bucket sum of the per-bucket GRU outputs (tiny: NB*V*B*HS f32 pass in the wrapper).
    return out.reshape(NB, Vd, B, HS).sum(axis=2)


def reference(g, m, b, h, w_ih, w_hh, b_ih, b_hh):
    """Pure-JAX f32 reference mirroring the PyTorch forward."""
    HS = h.shape[-1]
    B = b.shape[-1]
    out = jnp.zeros_like(h)
    for i in range(B):
        mask = (b[..., i] == 1.0).astype(jnp.float32)[..., None] * m
        m_b = (g[..., None] * mask).sum(axis=1)                       # (NB, V, MS)
        x = m_b.reshape(-1, m_b.shape[-1])
        hc = h.reshape(-1, HS)
        gi = x @ w_ih[i].T + b_ih[i]
        gh = hc @ w_hh[i].T + b_hh[i]
        r = jax.nn.sigmoid(gi[:, :HS] + gh[:, :HS])
        z = jax.nn.sigmoid(gi[:, HS:2 * HS] + gh[:, HS:2 * HS])
        n = jnp.tanh(gi[:, 2 * HS:] + r * gh[:, 2 * HS:])
        hn = (1.0 - z) * n + z * hc
        out = out + hn.reshape(h.shape)
    return out


if __name__ == "__main__":
    NB, V, MS, HS, B = 2, 8, 16, 32, 4   # batch, nodes, message size, hidden size, buckets

    key = jax.random.PRNGKey(0)
    k_g, k_m, k_b, k_h, k_wi, k_wh, k_bi, k_bh = jax.random.split(key, 8)

    # Adjacency mask, messages, bucket one-hot, hidden states.
    g = (jax.random.uniform(k_g, (NB, V, V)) > 0.5).astype(jnp.float32)
    m = jax.random.normal(k_m, (NB, V, V, MS), dtype=jnp.float32)
    bucket_idx = jax.random.randint(k_b, (NB, V, V), 0, B)
    b = jax.nn.one_hot(bucket_idx, B, dtype=jnp.float32)               # (NB, V, V, B)
    h = jax.random.normal(k_h, (NB, V, HS), dtype=jnp.float32)

    # Synthetic GRU parameters for u[1..B] (PyTorch gate order r, z, n).
    w_ih = 0.1 * jax.random.normal(k_wi, (B, 3 * HS, MS), dtype=jnp.float32)
    w_hh = 0.1 * jax.random.normal(k_wh, (B, 3 * HS, HS), dtype=jnp.float32)
    b_ih = 0.1 * jax.random.normal(k_bi, (B, 3 * HS), dtype=jnp.float32)
    b_hh = 0.1 * jax.random.normal(k_bh, (B, 3 * HS), dtype=jnp.float32)

    ref = reference(g, m, b, h, w_ih, w_hh, b_ih, b_hh)

    # Tight-tolerance check with f32 matmul operands (validates semantics).
    out_f32 = specialised_update_option1(g, m, b, h, w_ih, w_hh, b_ih, b_hh,
                                         compute_dtype=jnp.float32)
    out_f32 = jax.block_until_ready(out_f32)
    assert out_f32.shape == (NB, V, HS)
    assert jnp.allclose(out_f32, ref, atol=1e-3, rtol=1e-3), \
        f"f32 mismatch: max abs err {jnp.max(jnp.abs(out_f32 - ref))}"

    # Default (bf16 matmul operands, f32 accumulation / epilogue) fast path.
    out_bf16 = specialised_update_option1(g, m, b, h, w_ih, w_hh, b_ih, b_hh)
    out_bf16 = jax.block_until_ready(out_bf16)
    assert out_bf16.shape == (NB, V, HS)
    assert jnp.allclose(out_bf16, ref, atol=3e-2, rtol=3e-2), \
        f"bf16 mismatch: max abs err {jnp.max(jnp.abs(out_bf16 - ref))}"

    print("KERNEL_OK")
</pallas_src>

<mosaic_0001>
module attributes {stable_mosaic.version = 11 : i64} {
  func.func @_fused_mpnn_gru_kernel(%arg0: i32, %arg1: memref<2x8x8x16xf32, #tpu.memory_space<vmem>>, %arg2: memref<2x8x8x4xf32, #tpu.memory_space<vmem>>, %arg3: memref<2x8x8xf32, #tpu.memory_space<vmem>>, %arg4: memref<2x8x32xf32, #tpu.memory_space<vmem>>, %arg5: memref<16x384xf32, #tpu.memory_space<vmem>>, %arg6: memref<32x384xf32, #tpu.memory_space<vmem>>, %arg7: memref<1x384xf32, #tpu.memory_space<vmem>>, %arg8: memref<1x384xf32, #tpu.memory_space<vmem>>, %arg9: memref<4x384xf32, #tpu.memory_space<vmem>>, %arg10: memref<2x8x128xf32, #tpu.memory_space<vmem>>) attributes {dimension_semantics = [#tpu.dimension_semantics<parallel>], iteration_bounds = array<i64: 1>, scalar_prefetch = 0 : i64, scratch_operands = 0 : i64, tpu.core_type = #tpu.core_type<tc>, window_params = [{transform_indices = @transform_0, window_bounds = array<i64: 2, 8, 8, 16>}, {transform_indices = @transform_1, window_bounds = array<i64: 2, 8, 8, 4>}, {transform_indices = @transform_2, window_bounds = array<i64: 2, 8, 8>}, {transform_indices = @transform_3, window_bounds = array<i64: 2, 8, 32>}, {pipeline_mode = #tpu.pipeline_mode<synchronous>, transform_indices = @transform_4, window_bounds = array<i64: 16, 384>}, {pipeline_mode = #tpu.pipeline_mode<synchronous>, transform_indices = @transform_5, window_bounds = array<i64: 32, 384>}, {pipeline_mode = #tpu.pipeline_mode<synchronous>, transform_indices = @transform_6, window_bounds = array<i64: 1, 384>}, {pipeline_mode = #tpu.pipeline_mode<synchronous>, transform_indices = @transform_7, window_bounds = array<i64: 1, 384>}, {pipeline_mode = #tpu.pipeline_mode<synchronous>, transform_indices = @transform_8, window_bounds = array<i64: 4, 384>}, {transform_indices = @transform_9, window_bounds = array<i64: 2, 8, 128>}]} {
    %c0 = arith.constant 0 : index
    %c0_0 = arith.constant 0 : index
    %c0_1 = arith.constant 0 : index
    %c0_2 = arith.constant 0 : index
    %0 = vector.load %arg1[%c0, %c0_0, %c0_1, %c0_2] : memref<2x8x8x16xf32, #tpu.memory_space<vmem>>, vector<2x8x8x16xf32>
    %1 = vector.shape_cast %0 : vector<2x8x8x16xf32> to vector<128x16xf32>
    %c0_3 = arith.constant 0 : index
    %c0_4 = arith.constant 0 : index
    %2 = vector.load %arg5[%c0_3, %c0_4] : memref<16x384xf32, #tpu.memory_space<vmem>>, vector<16x384xf32>
    %cst = arith.constant dense<0.000000e+00> : vector<128x384xf32>
    %3 = tpu.matmul %1, %2, %cst {dimension_numbers = #tpu.dot_dimension_numbers<[1], [0], [0], [1], [0, 0, 1, 1], [], []>} : vector<128x16xf32>, vector<16x384xf32>, vector<128x384xf32> -> vector<128x384xf32>
    %4 = vector.shape_cast %3 : vector<128x384xf32> to vector<2x8x8x384xf32>
    %c0_5 = arith.constant 0 : index
    %c0_6 = arith.constant 0 : index
    %c0_7 = arith.constant 0 : index
    %c0_8 = arith.constant 0 : index
    %5 = vector.load %arg2[%c0_5, %c0_6, %c0_7, %c0_8] : memref<2x8x8x4xf32, #tpu.memory_space<vmem>>, vector<2x8x8x4xf32>
    %cst_9 = arith.constant 1.000000e+00 : f32
    %6 = vector.broadcast %cst_9 : f32 to vector<2x8x8x4xf32>
    %7 = arith.cmpf oeq, %5, %6 : vector<2x8x8x4xf32>
    %c0_10 = arith.constant 0 : index
    %c0_11 = arith.constant 0 : index
    %c0_12 = arith.constant 0 : index
    %8 = vector.load %arg3[%c0_10, %c0_11, %c0_12] : memref<2x8x8xf32, #tpu.memory_space<vmem>>, vector<2x8x8xf32>
    %9 = vector.shape_cast %8 : vector<2x8x8xf32> to vector<2x8x8x1xf32>
    %cst_13 = arith.constant 0.000000e+00 : f32
    %10 = vector.shape_cast %9 : vector<2x8x8x1xf32> to vector<2x8x8x1xf32>
    %11 = vector.broadcast %10 : vector<2x8x8x1xf32> to vector<2x8x8x4xf32>
    %12 = vector.broadcast %cst_13 : f32 to vector<2x8x8x4xf32>
    %13 = arith.select %7, %11, %12 : vector<2x8x8x4xi1>, vector<2x8x8x4xf32>
    %14 = vector.shape_cast %13 : vector<2x8x8x4xf32> to vector<128x4xf32>
    %c0_14 = arith.constant 0 : index
    %c0_15 = arith.constant 0 : index
    %15 = vector.load %arg9[%c0_14, %c0_15] : memref<4x384xf32, #tpu.memory_space<vmem>>, vector<4x384xf32>
    %cst_16 = arith.constant dense<0.000000e+00> : vector<128x384xf32>
    %16 = tpu.matmul %14, %15, %cst_16 {dimension_numbers = #tpu.dot_dimension_numbers<[1], [0], [0], [1], [0, 0, 1, 1], [], []>} : vector<128x4xf32>, vector<4x384xf32>, vector<128x384xf32> -> vector<128x384xf32>
    %17 = vector.shape_cast %16 : vector<128x384xf32> to vector<2x8x8x384xf32>
    %18 = arith.mulf %4, %17 : vector<2x8x8x384xf32>
    %cst_17 = arith.constant dense<0.000000e+00> : vector<2x8x384xf32>
    %19 = vector.multi_reduction <add>, %18, %cst_17 [1] : vector<2x8x8x384xf32> to vector<2x8x384xf32>
    %20 = vector.shape_cast %19 : vector<2x8x384xf32> to vector<16x384xf32>
    %c0_18 = arith.constant 0 : index
    %c0_19 = arith.constant 0 : index
    %21 = vector.load %arg7[%c0_18, %c0_19] : memref<1x384xf32, #tpu.memory_space<vmem>>, vector<1x384xf32>
    %22 = vector.broadcast %21 : vector<1x384xf32> to vector<16x384xf32>
    %23 = arith.addf %20, %22 : vector<16x384xf32>
    %c0_20 = arith.constant 0 : index
    %c0_21 = arith.constant 0 : index
    %c0_22 = arith.constant 0 : index
    %24 = vector.load %arg4[%c0_20, %c0_21, %c0_22] : memref<2x8x32xf32, #tpu.memory_space<vmem>>, vector<2x8x32xf32>
    %25 = vector.shape_cast %24 : vector<2x8x32xf32> to vector<16x32xf32>
    %c0_23 = arith.constant 0 : index
    %c0_24 = arith.constant 0 : index
    %26 = vector.load %arg6[%c0_23, %c0_24] : memref<32x384xf32, #tpu.memory_space<vmem>>, vector<32x384xf32>
    %cst_25 = arith.constant dense<0.000000e+00> : vector<16x384xf32>
    %27 = tpu.matmul %25, %26, %cst_25 {dimension_numbers = #tpu.dot_dimension_numbers<[1], [0], [0], [1], [0, 0, 1, 1], [], []>} : vector<16x32xf32>, vector<32x384xf32>, vector<16x384xf32> -> vector<16x384xf32>
    %c0_26 = arith.constant 0 : index
    %c0_27 = arith.constant 0 : index
    %28 = vector.load %arg8[%c0_26, %c0_27] : memref<1x384xf32, #tpu.memory_space<vmem>>, vector<1x384xf32>
    %29 = vector.broadcast %28 : vector<1x384xf32> to vector<16x384xf32>
    %30 = arith.addf %27, %29 : vector<16x384xf32>
    %31 = vector.extract_strided_slice %23 {offsets = [0, 0], sizes = [16, 128], strides = [1, 1]} : vector<16x384xf32> to vector<16x128xf32>
    %32 = vector.extract_strided_slice %30 {offsets = [0, 0], sizes = [16, 128], strides = [1, 1]} : vector<16x384xf32> to vector<16x128xf32>
    %33 = arith.addf %31, %32 : vector<16x128xf32>
    %34 = arith.negf %33 : vector<16x128xf32>
    %35 = math.exp %34 : vector<16x128xf32>
    %cst_28 = arith.constant 1.000000e+00 : f32
    %36 = vector.broadcast %cst_28 : f32 to vector<16x128xf32>
    %37 = arith.addf %36, %35 : vector<16x128xf32>
    %38 = arith.divf %36, %37 : vector<16x128xf32>
    %39 = vector.extract_strided_slice %23 {offsets = [0, 128], sizes = [16, 128], strides = [1, 1]} : vector<16x384xf32> to vector<16x128xf32>
    %40 = vector.extract_strided_slice %30 {offsets = [0, 128], sizes = [16, 128], strides = [1, 1]} : vector<16x384xf32> to vector<16x128xf32>
    %41 = arith.addf %39, %40 : vector<16x128xf32>
    %42 = arith.negf %41 : vector<16x128xf32>
    %43 = math.exp %42 : vector<16x128xf32>
    %cst_29 = arith.constant 1.000000e+00 : f32
    %44 = vector.broadcast %cst_29 : f32 to vector<16x128xf32>
    %45 = arith.addf %44, %43 : vector<16x128xf32>
    %46 = arith.divf %44, %45 : vector<16x128xf32>
    %47 = vector.extract_strided_slice %23 {offsets = [0, 256], sizes = [16, 128], strides = [1, 1]} : vector<16x384xf32> to vector<16x128xf32>
    %48 = vector.extract_strided_slice %30 {offsets = [0, 256], sizes = [16, 128], strides = [1, 1]} : vector<16x384xf32> to vector<16x128xf32>
    %49 = arith.mulf %38, %48 : vector<16x128xf32>
    %50 = arith.addf %47, %49 : vector<16x128xf32>
    %51 = math.tanh %50 : vector<16x128xf32>
    %52 = vector.shape_cast %25 : vector<16x32xf32> to vector<16x1x32xf32>
    %53 = vector.shape_cast %52 : vector<16x1x32xf32> to vector<16x1x32xf32>
    %54 = vector.broadcast %53 : vector<16x1x32xf32> to vector<16x4x32xf32>
    %55 = vector.shape_cast %54 : vector<16x4x32xf32> to vector<16x128xf32>
    %56 = arith.subf %55, %51 : vector<16x128xf32>
    %57 = arith.mulf %46, %56 : vector<16x128xf32>
    %58 = arith.addf %51, %57 : vector<16x128xf32>
    %59 = vector.shape_cast %58 : vector<16x128xf32> to vector<2x8x128xf32>
    %c0_30 = arith.constant 0 : index
    %c0_31 = arith.constant 0 : index
    %c0_32 = arith.constant 0 : index
    %60 = vector.load %arg10[%c0_30, %c0_31, %c0_32] : memref<2x8x128xf32, #tpu.memory_space<vmem>>, vector<2x8x128xf32>
    tpu.vector_store %arg10[%c0_30, %c0_31, %c0_32], %59 {strides = array<i32>} : memref<2x8x128xf32, #tpu.memory_space<vmem>>, vector<2x8x128xf32>,
    return
  }
  func.func @transform_0(%arg0: i32) -> (i32, i32, i32, i32) {
    %c0_i32 = arith.constant 0 : i32
    %c0_i32_0 = arith.constant 0 : i32
    %c0_i32_1 = arith.constant 0 : i32
    %c0_i32_2 = arith.constant 0 : i32
    return %arg0, %c0_i32, %c0_i32_0, %c0_i32_1 : i32, i32, i32, i32
  }
  func.func @transform_1(%arg0: i32) -> (i32, i32, i32, i32) {
    %c0_i32 = arith.constant 0 : i32
    %c0_i32_0 = arith.constant 0 : i32
    %c0_i32_1 = arith.constant 0 : i32
    %c0_i32_2 = arith.constant 0 : i32
    return %arg0, %c0_i32, %c0_i32_0, %c0_i32_1 : i32, i32, i32, i32
  }
  func.func @transform_2(%arg0: i32) -> (i32, i32, i32) {
    %c0_i32 = arith.constant 0 : i32
    %c0_i32_0 = arith.constant 0 : i32
    %c0_i32_1 = arith.constant 0 : i32
    return %arg0, %c0_i32, %c0_i32_0 : i32, i32, i32
  }
  func.func @transform_3(%arg0: i32) -> (i32, i32, i32) {
    %c0_i32 = arith.constant 0 : i32
    %c0_i32_0 = arith.constant 0 : i32
    %c0_i32_1 = arith.constant 0 : i32
    return %arg0, %c0_i32, %c0_i32_0 : i32, i32, i32
  }
  func.func @transform_4(%arg0: i32) -> (i32, i32) {
    %c0_i32 = arith.constant 0 : i32
    %c0_i32_0 = arith.constant 0 : i32
    %c0_i32_1 = arith.constant 0 : i32
    return %c0_i32, %c0_i32_0 : i32, i32
  }
  func.func @transform_5(%arg0: i32) -> (i32, i32) {
    %c0_i32 = arith.constant 0 : i32
    %c0_i32_0 = arith.constant 0 : i32
    %c0_i32_1 = arith.constant 0 : i32
    return %c0_i32, %c0_i32_0 : i32, i32
  }
  func.func @transform_6(%arg0: i32) -> (i32, i32) {
    %c0_i32 = arith.constant 0 : i32
    %c0_i32_0 = arith.constant 0 : i32
    %c0_i32_1 = arith.constant 0 : i32
    return %c0_i32, %c0_i32_0 : i32, i32
  }
  func.func @transform_7(%arg0: i32) -> (i32, i32) {
    %c0_i32 = arith.constant 0 : i32
    %c0_i32_0 = arith.constant 0 : i32
    %c0_i32_1 = arith.constant 0 : i32
    return %c0_i32, %c0_i32_0 : i32, i32
  }
  func.func @transform_8(%arg0: i32) -> (i32, i32) {
    %c0_i32 = arith.constant 0 : i32
    %c0_i32_0 = arith.constant 0 : i32
    %c0_i32_1 = arith.constant 0 : i32
    return %c0_i32, %c0_i32_0 : i32, i32
  }
  func.func @transform_9(%arg0: i32) -> (i32, i32, i32) {
    %c0_i32 = arith.constant 0 : i32
    %c0_i32_0 = arith.constant 0 : i32
    %c0_i32_1 = arith.constant 0 : i32
    return %arg0, %c0_i32, %c0_i32_0 : i32, i32, i32
  }
}

</mosaic_0001>

<bundles_post_ra>
// kernel: tpu_custom_call.1
= control target key start
LH: loop header
LB: loop body
LE: loop exit
PB: predicated region body
PF: predicated region fallthrough
CT: control target
= control target key end

     0   :  { %14 = vsyncpa [#allocation3], 0  ;;  %s2302_s0 = inlined_call_operand.vmem [shape: f32[2,8,8,16], index: 0, kind: input, shape index: {}]   ;;  %s2303_s1 = inlined_call_operand.vmem [shape: f32[2,8,8,4], index: 1, kind: input, shape index: {}]   ;;  %s2304_s2 = inlined_call_operand.vmem [shape: f32[2,8,8], index: 2, kind: input, shape index: {}]   ;;  %s2305_s3 = inlined_call_operand.hbm [shape: f32[2,8,32], index: 3, kind: input, shape index: {}]   ;;  %s2306_s4 = inlined_call_operand.vmem [shape: f32[16,384], index: 4, kind: input, shape index: {}]   ;;  %s2307_s5 = inlined_call_operand.hbm [shape: f32[32,384], index: 5, kind: input, shape index: {}]   ;;  %s2308_s6 = inlined_call_operand.vmem [shape: f32[1,384], index: 6, kind: input, shape index: {}]   ;;  %s2309_s7 = inlined_call_operand.hbm [shape: f32[1,384], index: 7, kind: input, shape index: {}]   ;;  %s2310_s8 = inlined_call_operand.hbm [shape: f32[4,384], index: 8, kind: input, shape index: {}]   ;;  %s2311_s9 = inlined_call_operand.hbm [shape: f32[2,8,128], index: 9, kind: output, shape index: {}]  }
   0x1   :  { %15 = vsyncpa [#allocation6], 0 }
   0x2   :  { %16 = vsyncpa [#allocation9], 0  ;;  %s43_s11 = sshll.u32 %s2307_s5, 4  ;;  %s44_s11 = int_to_ptr.hbm [resolvable:$true] %s43_s11 }
   0x3   :  { %17 = vsyncpa [#allocation4], 0  ;;  %s1566_s12 = smov [#allocation5]   ;;  %s28_s16 = sshll.u32 %s2305_s3, 4  ;;  %s29_s16 = int_to_ptr.hbm [resolvable:$true] %s28_s16 }
   0x4   :  { %s45_s13 = sshll.u32 %s1566_s12, 4  ;;  %s1567_s17 = smov 384   ;;  %s46_s13 = int_to_ptr.vmem [resolvable:$true] %s45_s13 }
   0x5   :  { %s1568_s18 = smov 24   ;;  %s1569_s19 = smov [#allocation2]  }
   0x6   :  { %51 = dma.hbm_to_vmem [thread:$0]  %s44_s11, 1536, %s46_s13, [#allocation6], %s1567_s17, %s1567_s17, %s1568_s18  }
   0x7   :  { %s30_s20 = sshll.u32 %s1569_s19, 4  ;;  %s1570_s21 = smov 128   ;;  %s31_s20 = int_to_ptr.vmem [resolvable:$true] %s30_s20 }
   0x8   :  { %s1571_s22 = smov 8   ;;  %s59_s24 = sshll.u32 %s2309_s7, 4  ;;  %s60_s24 = int_to_ptr.hbm [resolvable:$true] %s59_s24 }
   0x9   :  { %36 = dma.hbm_to_vmem [thread:$0]  %s29_s16, 256, %s31_s20, [#allocation3], %s1570_s21, %s1570_s21, %s1571_s22  }
   0xa   :  { %s1572_s25 = smov [#allocation7]   ;;  %s70_s28 = sshll.u32 %s2310_s8, 4  ;;  %s71_s28 = int_to_ptr.hbm [resolvable:$true] %s70_s28 }
   0xb   :  { %s61_s3 = sshll.u32 %s1572_s25, 4  ;;  %s1573_s29 = smov [#allocation8]   ;;  %s62_s3 = int_to_ptr.vmem [resolvable:$true] %s61_s3 }
   0xc   :  { %64 = dma.hbm_to_vmem [thread:$0]  %s60_s24, 48, %s62_s3, [#allocation6]  }
   0xd   :  { %s72_s30 = sshll.u32 %s1573_s29, 4  ;;  %s73_s30 = int_to_ptr.vmem [resolvable:$true] %s72_s30 }
   0xe   :  { %75 = dma.hbm_to_vmem [thread:$0]  %s71_s28, 192, %s73_s30, [#allocation9]  }
   0xf   :  { %1558 = dma.done.wait [#allocation3], 256  }
  0x10   :  { %1559 = vsyncadd [#allocation3], 4294967040 }
  0x11   :  { %1560 = dma.done.wait [#allocation6], 1584  }
  0x12   :  { %1561 = vsyncadd [#allocation6], 4294965712 }
  0x13   :  { %1562 = dma.done.wait [#allocation9], 192  }
  0x14   :  { %1563 = vsyncadd [#allocation9], 4294967104  ;;  %v393_v0 = vlaneseq  ;;  %v391_v2 = vld [vmem:[%s2304_s2 + $0x8] sm:$0xff]  ;;  %v390_v3 = vld [vmem:[%s2304_s2] sm:$0xff]  ;;  %vm114_vm0 = vcmask 130048   ;;  %vm579_vm1 = vcmask 1043456  }
  0x15   :  { %v112_v4 = vld [vmem:[%s2306_s4 + $0x20] sm:$0xff]  ;;  %v448_v5 = vperm.slane %v391_v2, 0  ;;  %v434_v6 = vperm.slane %v390_v3, 6  ;;  %v109_v7 = vld [vmem:[%s2306_s4 + $0x8] sm:$0xff]  ;;  %v462_v9 = vperm.slane %v391_v2, 2  ;;  %v455_v10 = vperm.slane %v391_v2, 1 }
  0x16   :  { %v394_v1 = vshrl.u32 %v393_v0, 7  ;;  %242 = vmatpush.msra.mxu1 %v112_v4  ;;  %v1660_v8 = vld [vmem:[%s2302_s0] sm:$0xff]  ;;  %v441_v11 = vperm.slane %v390_v3, 7  ;;  %v1667_v12 = vld [vmem:[%s2302_s0 + $0x8] sm:$0xff]  ;;  %v469_v13 = vperm.slane %v391_v2, 3  ;;  %v111_v14 = vld [vmem:[%s2306_s4 + $0x18] sm:$0xff] }
  0x17   :  { %177 = vmatpush.msra.mxu0 %v111_v14  ;;  %v108_v15 = vld [vmem:[%s2306_s4] sm:$0xff]  ;;  %1398 = vmatpush.msra.mxu2 %v111_v14  ;;  %v483_v16 = vperm.slane %v391_v2, 5  ;;  %v476_v17 = vperm.slane %v391_v2, 4  ;;  %v1680_v18 = vld [vmem:[%s2302_s0 + $0x10] sm:$0xff]  ;;  %v490_v19 = vperm.slane %v391_v2, 6  ;;  %v497_v20 = vperm.slane %v391_v2, 7 }
  0x18   :  { %1416 = vset.pattern.permute.xlu1 %v394_v1  ;;  %1415 = vset.pattern.permute.xlu0 %v394_v1  ;;  %v392_v21 = vperm.slane %v390_v3, 0  ;;  %v1689_v22 = vld [vmem:[%s2302_s0 + $0x18] sm:$0xff]  ;;  %v399_v23 = vperm.slane %v390_v3, 1  ;;  %v406_v24 = vperm.slane %v390_v3, 2  ;;  %v413_v25 = vperm.slane %v390_v3, 3  ;;  %v1698_v26 = vld [vmem:[%s2302_s0 + $0x20] sm:$0xff] }
  0x19   :  { %1417 = vset.pattern.permute.xlu2 %v394_v1  ;;  %243 = vmatpush.msra.mxu1 %v109_v7  ;;  %v420_v27 = vperm.slane %v390_v3, 4  ;;  %v1707_v28 = vld [vmem:[%s2302_s0 + $0x50] sm:$0xff]  ;;  %v427_v29 = vperm.slane %v390_v3, 5  ;;  %v1714_v30 = vld [vmem:[%s2302_s0 + $0x28] sm:$0xff]  ;;  %v1723_v31 = vld [vmem:[%s2302_s0 + $0x58] sm:$0xff]  ;;  %vm530_vm3 = vcmask 31744  }
  0x1a   :  { %1305 = vmatmul.msk.f32.vlgmr.msra.gmra.mxu1 %vm114_vm0, %v1660_v8  ;;  %178 = vmatpush.msra.mxu0 %v108_v15  ;;  %v1730_v32 = vld [vmem:[%s2302_s0 + $0x30] sm:$0xff]  ;;  %v1739_v33 = vld [vmem:[%s2302_s0 + $0x60] sm:$0xff]  ;;  %v1746_v34 = vld [vmem:[%s2302_s0 + $0x38] sm:$0xff]  ;;  %s1577_s12 = smov 64   ;;  %s1578_s13 = smov 96  }
  0x1b   :  { %1289 = vmatmul.msk.f32.vlgmr.msra.gmra.mxu0 %vm114_vm0, %v1660_v8  ;;  %1399 = vmatpush.msra.mxu2 %v108_v15  ;;  %v1755_v35 = vld [vmem:[%s2302_s0 + $0x68] sm:$0xff]  ;;  %v1762_v36 = vld [vmem:[%s2302_s0 + $0x40] sm:$0xff]  ;;  %v1771_v37 = vld [vmem:[%s2302_s0 + $0x70] sm:$0xff]  ;;  %s1274_s18 = sshll.u32 %s2311_s9, 4  ;;  %s1275_s18 = int_to_ptr.hbm [resolvable:$true] %s1274_s18 }
  0x1c   :  { %1299 = vmatmul.msk.f32.vlgmr.msra.gmra.mxu2 %vm114_vm0, %v1707_v28  ;;  %v1778_v38 = vld [vmem:[%s2302_s0 + $0x48] sm:$0xff]  ;;  %v520_v39 = vld [vmem:[#allocation8] sm:$0xff]  ;;  %v110_v44 = vld [vmem:[%s2306_s4 + $0x10] sm:$0xff] }
  0x1d   :  { %524 = vst [vmem:[#allocation1] ss:$2 sm:$0xff] %v520_v39  ;;  %v1793_v42 = vld [vmem:[%s2302_s0 + $0x78] sm:$0xff]  ;;  %v113_v43 = vld [vmem:[%s2306_s4 + $0x28] sm:$0xff]  ;;  %v521_v45 = vld [vmem:[#allocation8 + $0x8] sm:$0xf] }
  0x1e   :  { %307 = vmatpush.msrb.mxu2 %v113_v43  ;;  %526 = vst [vmem:[#allocation1 + $0x10] ss:$2 sm:$0xff] %v521_v45  ;;  %v364_v47 = vld [vmem:[%s2303_s1 + $0x30] sm:$0xff]  ;;  %v365_v52 = vld [vmem:[%s2303_s1 + $0x38] sm:$0xff]  ;;  %v366_v55 = vld [vmem:[%s2303_s1 + $0x40] sm:$0xff] }
  0x1f   :  { %vm380_vm2 = vcmp.eq.f32.partialorder %v364_v47, 1.0  ;;  %vm381_vm4 = vcmp.eq.f32.partialorder %v365_v52, 1.0  ;;  %vm382_vm5 = vcmp.eq.f32.partialorder %v366_v55, 1.0  ;;  %v367_v63 = vld [vmem:[%s2303_s1 + $0x48] sm:$0xff]  ;;  %v358_v0 = vld [vmem:[%s2303_s1] sm:$0xff]  ;;  %v368_v3 = vld [vmem:[%s2303_s1 + $0x50] sm:$0xff] }
  0x20   :  { %453 = vperm.xlu1 %1416, %v448_v5   ;;  %439 = vperm.xlu0 %1415, %v434_v6   ;;  %vm383_vm6 = vcmp.eq.f32.partialorder %v367_v63, 1.0  ;;  %vm374_vm7 = vcmp.eq.f32.partialorder %v358_v0, 1.0  ;;  %v359_v5 = vld [vmem:[%s2303_s1 + $0x8] sm:$0xff]  ;;  %vm384_vm8 = vcmp.eq.f32.partialorder %v368_v3, 1.0  ;;  %v896_v15 = vld [vmem:[#allocation5 + $0x48] sm:$0xff]  ;;  %v373_v52 = vld [vmem:[%s2303_s1 + $0x78] sm:$0xff] }
  0x21   :  { %467 = vperm.xlu2 %1417, %v462_v9   ;;  %308 = vmatpush.msrb.mxu2 %v110_v44  ;;  %vm375_vm9 = vcmp.eq.f32.partialorder %v359_v5, 1.0  ;;  %v372_v44 = vld [vmem:[%s2303_s1 + $0x70] sm:$0xff] }
  0x22   :  { %1306 = vmatmul.msk.f32.gmra.mxu1 %vm114_vm0, %v1667_v12  ;;  %v894_v55 = vld [vmem:[#allocation5 + $0x38] sm:$0xff] }
  0x23   :  { %1290 = vmatmul.msk.f32.gmra.mxu0 %vm114_vm0, %v1667_v12  ;;  %v2014_v5 = vld [vmem:[#allocation2 + $0x8] sm:$0xff] }
  0x24   :  { %1300 = vmatmul.msk.f32.gmra.mxu2 %vm114_vm0, %v1723_v31  ;;  %v527_v40 = vld.sshfl [vmem:[#allocation1] sm:$0xff pattern:$0x75316420]  ;;  %v528_v41 = vld.sshfl [vmem:[#allocation1 + $0x8] sm:$0xff pattern:$0x75316420] }
  0x25   :  { %1400 = vmatpush.msk.msra.mxu3 %vm579_vm1, %v527_v40  ;;  %1337 = vmatpush.msk.msrb.mxu1 %vm579_vm1, %v527_v40  ;;  %v529_v46 = vld.sshfl [vmem:[#allocation1 + $0x10] sm:$0xff pattern:$0x75316420] }
  0x26   :  { %1371 = vmatpush.msk.msrb.mxu0 %vm579_vm1, %v529_v46  ;;  %v898_v46 = vld [vmem:[#allocation5 + $0x58] sm:$0xff] }
  0x27   :  { %1354 = vmatpush.msk.msrb.mxu3 %vm579_vm1, %v528_v41  ;;  %926 = vmatpush.msra.mxu1 %v896_v15  ;;  %vm388_vm1 = vcmp.eq.f32.partialorder %v372_v44, 1.0 }
  0x28   :  { %460 = vperm.xlu1 %1416, %v455_v10   ;;  %446 = vperm.xlu0 %1415, %v441_v11  }
  0x29   :  { %474 = vperm.xlu2 %1417, %v469_v13   ;;  %v360_v13 = vld [vmem:[%s2303_s1 + $0x10] sm:$0xff] }
  0x2a   :  { %1307 = vmatmul.msk.f32.gmra.mxu1 %vm114_vm0, %v1680_v18  ;;  %vm376_vm11 = vcmp.eq.f32.partialorder %v360_v13, 1.0 }
  0x2b   :  { %1291 = vmatmul.msk.f32.gmra.mxu0 %vm114_vm0, %v1680_v18 }
  0x2c   :  { %1301 = vmatmul.msk.f32.gmra.mxu2 %vm114_vm0, %v1739_v33 }
  0x30   :  { %488 = vperm.xlu1 %1416, %v483_v16   ;;  %481 = vperm.xlu0 %1415, %v476_v17   ;;  %v893_v16 = vld [vmem:[#allocation5 + $0x30] sm:$0xff] }
  0x31   :  { %495 = vperm.xlu2 %1417, %v490_v19   ;;  %v897_v17 = vld [vmem:[#allocation5 + $0x50] sm:$0xff]  ;;  %927 = vmatpush.msra.mxu1 %v893_v16 }
  0x32   :  { %1308 = vmatmul.msk.f32.gmra.mxu1 %vm114_vm0, %v1689_v22  ;;  %949 = vmatpush.msra.mxu2 %v897_v17 }
  0x33   :  { %1292 = vmatmul.msk.f32.gmra.mxu0 %vm114_vm0, %v1689_v22 }
  0x34   :  { %1302 = vmatmul.msk.f32.gmra.mxu2 %vm114_vm0, %v1755_v35 }
  0x35   :  { %950 = vmatpush.msra.mxu2 %v894_v55 }
  0x38   :  { %502 = vperm.xlu0 %1415, %v497_v20   ;;  %397 = vperm.xlu1 %1416, %v392_v21   ;;  %v887_v20 = vld [vmem:[#allocation5] sm:$0xff] }
  0x39   :  { %404 = vperm.xlu2 %1417, %v399_v23  }
  0x3a   :  { %1309 = vmatmul.msk.f32.gmra.mxu1 %vm114_vm0, %v1698_v26 }
  0x3b   :  { %1293 = vmatmul.msk.f32.gmra.mxu0 %vm114_vm0, %v1698_v26 }
  0x3c   :  { %1303 = vmatmul.msk.f32.gmra.mxu2 %vm114_vm0, %v1771_v37 }
  0x40   :  { %411 = vperm.xlu0 %1415, %v406_v24   ;;  %418 = vperm.xlu1 %1416, %v413_v25   ;;  %v370_v24 = vld [vmem:[%s2303_s1 + $0x60] sm:$0xff]  ;;  %v361_v25 = vld [vmem:[%s2303_s1 + $0x18] sm:$0xff] }
  0x41   :  { %425 = vperm.xlu2 %1417, %v420_v27   ;;  %vm386_vm12 = vcmp.eq.f32.partialorder %v370_v24, 1.0  ;;  %vm377_vm13 = vcmp.eq.f32.partialorder %v361_v25, 1.0 }
  0x42   :  { %1310 = vmatmul.msk.f32.gmra.mxu1 %vm114_vm0, %v1714_v30 }
  0x43   :  { %1294 = vmatmul.msk.f32.gmra.mxu0 %vm114_vm0, %v1714_v30 }
  0x44   :  { %1304 = vmatmul.msk.f32.gmra.mxu2 %vm114_vm0, %v1793_v42 }
  0x48   :  { %432 = vperm.xlu0 %1415, %v427_v29  }
  0x4a   :  { %1311 = vmatmul.msk.f32.gmra.mxu1 %vm114_vm0, %v1730_v32 }
  0x4b   :  { %1295 = vmatmul.msk.f32.gmra.mxu0 %vm114_vm0, %v1730_v32 }
  0x4c   :  { %1321 = vmatmul.msk.f32.vlgmr.msrb.gmra.mxu2 %vm114_vm0, %v1660_v8 }
  0x52   :  { %1312 = vmatmul.msk.f32.gmra.mxu1 %vm114_vm0, %v1746_v34 }
  0x53   :  { %1296 = vmatmul.msk.f32.gmra.mxu0 %vm114_vm0, %v1746_v34 }
  0x54   :  { %1322 = vmatmul.msk.f32.gmra.mxu2 %vm114_vm0, %v1667_v12  ;;  %v369_v12 = vld [vmem:[%s2303_s1 + $0x58] sm:$0xff] }
  0x55   :  { %vm385_vm10 = vcmp.eq.f32.partialorder %v369_v12, 1.0 }
  0x5a   :  { %1313 = vmatmul.msk.f32.gmra.mxu1 %vm114_vm0, %v1762_v36 }
  0x5b   :  { %1297 = vmatmul.msk.f32.gmra.mxu0 %vm114_vm0, %v1762_v36 }
  0x5c   :  { %1323 = vmatmul.msk.f32.gmra.mxu2 %vm114_vm0, %v1680_v18  ;;  %v890_v18 = vld [vmem:[#allocation5 + $0x18] sm:$0xff] }
  0x5d   :  { %928 = vmatpush.msra.mxu1 %v890_v18 }
  0x5f   :  { %929 = vmatpush.msra.mxu1 %v887_v20 }
  0x62   :  { %1314 = vmatmul.msk.f32.gmra.mxu1 %vm114_vm0, %v1778_v38 }
  0x63   :  { %1298 = vmatmul.msk.f32.gmra.mxu0 %vm114_vm0, %v1778_v38 }
  0x64   :  { %1324 = vmatmul.msk.f32.gmra.mxu2 %vm114_vm0, %v1689_v22 }
  0x6a   :  { %1315 = vmatmul.msk.f32.gmra.mxu1 %vm114_vm0, %v1707_v28 }
  0x6c   :  { %1325 = vmatmul.msk.f32.gmra.mxu2 %vm114_vm0, %v1698_v26 }
  0x72   :  { %1316 = vmatmul.msk.f32.gmra.mxu1 %vm114_vm0, %v1723_v31 }
  0x74   :  { %1326 = vmatmul.msk.f32.gmra.mxu2 %vm114_vm0, %v1714_v30 }
  0x7a   :  { %1317 = vmatmul.msk.f32.gmra.mxu1 %vm114_vm0, %v1739_v33 }
  0x7b   :  { %v468_v48 = vpop.permute.xlu2 %467 }
  0x7c   :  { %1327 = vmatmul.msk.f32.gmra.mxu2 %vm114_vm0, %v1730_v32  ;;  %v1886_v10 = vsel %vm384_vm8, %v468_v48, 0.0  ;;  %v371_v32 = vld [vmem:[%s2303_s1 + $0x68] sm:$0xff] }
  0x7d   :  { %vm387_vm14 = vcmp.eq.f32.partialorder %v371_v32, 1.0 }
  0x82   :  { %1318 = vmatmul.msk.f32.gmra.mxu1 %vm114_vm0, %v1755_v35 }
  0x83   :  { %v475_v57 = vpop.permute.xlu2 %474 }
  0x84   :  { %1328 = vmatmul.msk.f32.gmra.mxu2 %vm114_vm0, %v1746_v34  ;;  %v1906_v21 = vsel %vm385_vm10, %v475_v57, 0.0  ;;  %v362_v34 = vld [vmem:[%s2303_s1 + $0x20] sm:$0xff] }
  0x85   :  { %vm378_vm15 = vcmp.eq.f32.partialorder %v362_v34, 1.0 }
  0x8a   :  { %1319 = vmatmul.msk.f32.gmra.mxu1 %vm114_vm0, %v1771_v37 }
  0x8b   :  { %v1860_v1 = vpop.permute.xlu2 %495 }
  0x8c   :  { %1329 = vmatmul.msk.f32.gmra.mxu2 %vm114_vm0, %v1762_v36 }
  0x92   :  { %v454_v49 = vpop.permute.xlu1 %453  ;;  %v440_v50 = vpop.permute.xlu0 %439  ;;  %1320 = vmatmul.msk.f32.gmra.mxu1 %vm114_vm0, %v1793_v42 }
  0x93   :  { %v1824_v51 = vsel %vm380_vm2, %v440_v50, 0.0  ;;  %v1846_v59 = vsel %vm382_vm5, %v454_v49, 0.0  ;;  %v405_v9 = vpop.permute.xlu2 %404  ;;  %v1974_v49 = vsel %vm388_vm1, %v1860_v1, 0.0  ;;  %vm907_vm5 = vcmask 261120  }
  0x94   :  { %1344 = vmatmul.msk.f32.vlgmr.msra.gmra.mxu3 %vm530_vm3, %v1824_v51  ;;  %v1888_v11 = vsel %vm375_vm9, %v405_v9, 0.0  ;;  %1330 = vmatmul.msk.f32.gmra.mxu2 %vm114_vm0, %v1778_v38  ;;  %v363_v38 = vld [vmem:[%s2303_s1 + $0x28] sm:$0xff]  ;;  %s1576_s1 = smov 32   ;;  %vm1254_vm9 = vcmask 523264  }
  0x95   :  { %vm379_vm2 = vcmp.eq.f32.partialorder %v363_v38, 1.0 }
  0x97   :  { %v1842_v58 = vpop.f32.mrf.mxu1 }
  0x98   :  { %v1944_v36 = vpop.f32.mrf.mxu0 }
  0x9a   :  { %v461_v53 = vpop.permute.xlu1 %460  ;;  %v447_v54 = vpop.permute.xlu0 %446 }
  0x9b   :  { %v1838_v56 = vsel %vm381_vm4, %v447_v54, 0.0  ;;  %v1867_v4 = vsel %vm383_vm6, %v461_v53, 0.0  ;;  %v426_v39 = vpop.permute.xlu2 %425  ;;  %v892_v54 = vld [vmem:[#allocation5 + $0x28] sm:$0xff]  ;;  %vm389_vm4 = vcmp.eq.f32.partialorder %v373_v52, 1.0  ;;  %vm1116_vm6 = vcmask 1047556  }
  0x9c   :  { %1345 = vmatmul.msk.f32.gmra.mxu3 %vm530_vm3, %v1838_v56  ;;  %v1951_v41 = vsel %vm378_vm15, %v426_v39, 0.0  ;;  %1331 = vmatmul.msk.f32.gmra.mxu2 %vm114_vm0, %v1707_v28  ;;  %v895_v28 = vld [vmem:[#allocation5 + $0x40] sm:$0xff] }
  0x9f   :  { %v1852_v62 = vpop.f32.mrf.mxu1  ;;  %v1967_v45 = vpop.f32.mrf.mxu2 }
  0xa0   :  { %v1969_v48 = vpop.f32.mrf.mxu0 }
  0xa2   :  { %v1848_v60 = vpop.permute.xlu1 %488  ;;  %v482_v61 = vpop.permute.xlu0 %481 }
  0xa3   :  { %v1926_v27 = vsel %vm386_vm12, %v482_v61, 0.0  ;;  %v1949_v40 = vsel %vm387_vm14, %v1848_v60, 0.0  ;;  %v889_v60 = vld [vmem:[#allocation5 + $0x10] sm:$0xff] }
  0xa4   :  { %1346 = vmatmul.msk.f32.gmra.mxu3 %vm530_vm3, %v1846_v59  ;;  %1332 = vmatmul.msk.f32.gmra.mxu2 %vm114_vm0, %v1723_v31  ;;  %v1993_v61 = vld [vmem:[#allocation2] sm:$0xff] }
  0xa5   :  { %v1074_v3 = vrot.slane %v1993_v61, 6  ;;  %v1070_v9 = vrot.slane %v1993_v61, 2  ;;  %v1075_v12 = vrot.slane %v1993_v61, 7  ;;  %v1072_v15 = vrot.slane %v1993_v61, 4 }
  0xa6   :  { %v1073_v17 = vrot.slane %v1993_v61, 5  ;;  %v1083_v44 = vperm.slane %v1993_v61, 0 }
  0xa7   :  { %v1878_v7 = vpop.f32.mrf.mxu1  ;;  %v1989_v57 = vpop.f32.mrf.mxu2  ;;  %v1089_v16 = vperm.slane %v1074_v3, 0  ;;  %v1090_v20 = vperm.slane %v1075_v12, 0  ;;  %v1087_v25 = vperm.slane %v1072_v15, 0 }
  0xa8   :  { %v1995_v63 = vpop.f32.mrf.mxu0 }
  0xaa   :  { %v398_v2 = vpop.permute.xlu1 %397  ;;  %v1882_v8 = vpop.permute.xlu0 %502 }
  0xab   :  { %v1872_v6 = vsel %vm374_vm7, %v398_v2, 0.0  ;;  %v1998_v0 = vsel %vm389_vm4, %v1882_v8, 0.0  ;;  %v1071_v2 = vrot.slane %v1993_v61, 3  ;;  %v1069_v8 = vrot.slane %v1993_v61, 1 }
  0xac   :  { %1338 = vmatmul.msk.f32.vlgmr.msrb.gmra.mxu1 %vm530_vm3, %v1872_v6  ;;  %1347 = vmatmul.msk.f32.gmra.mxu3 %vm530_vm3, %v1867_v4 }
  0xad   :  { %1372 = vmatmul.msk.f32.vlgmr.msrb.gmra.mxu0 %vm530_vm3, %v1872_v6  ;;  %972 = vmatpush.msrb.mxu1 %v898_v46  ;;  %v1086_v13 = vperm.slane %v1071_v2, 0  ;;  %v1084_v18 = vperm.slane %v1069_v8, 0  ;;  %v1128_v46 = vrot.slane %v1089_v16, 4 }
  0xae   :  { %1333 = vmatmul.msk.f32.gmra.mxu2 %vm114_vm0, %v1739_v33 }
  0xaf   :  { %v1900_v14 = vpop.f32.mrf.mxu1  ;;  %973 = vmatpush.msrb.mxu1 %v895_v28  ;;  %v2008_v31 = vpop.f32.mrf.mxu2  ;;  %v1122_v34 = vrot.slane %v1086_v13, 4  ;;  %v1134_v28 = vrot.slane %v1090_v20, 4  ;;  %v1129_v55 = vsel %vm1116_vm6, %v1128_v46, %v1087_v25 }
  0xb0   :  { %v2025_v33 = vpop.f32.mrf.mxu0 }
  0xb1   :  { %974 = vmatpush.msrb.mxu1 %v892_v54  ;;  %v1123_v52 = vsel %vm1116_vm6, %v1122_v34, %v1084_v18 }
  0xb2   :  { %v412_v19 = vpop.permute.xlu0 %411  ;;  %v419_v26 = vpop.permute.xlu1 %418 }
  0xb3   :  { %v1908_v22 = vsel %vm376_vm11, %v412_v19, 0.0  ;;  %v1928_v29 = vsel %vm377_vm13, %v419_v26, 0.0  ;;  %975 = vmatpush.msrb.mxu1 %v889_v60  ;;  %v1085_v19 = vperm.slane %v1070_v9, 0  ;;  %v1574_v26 = vmov 1983009808  }
  0xb4   :  { %1339 = vmatmul.msk.f32.gmra.mxu1 %vm530_vm3, %v1888_v11  ;;  %1348 = vmatmul.msk.f32.gmra.mxu3 %vm530_vm3, %v1886_v10  ;;  %v1119_v32 = vunpack.c.l.s4 %v1574_v26  ;;  %v1575_v60 = vmov 1934713408   ;;  %vm1257_vm11 = vcmask 785408  }
  0xb5   :  { %1373 = vmatmul.msk.f32.gmra.mxu0 %vm530_vm3, %v1888_v11  ;;  %v1115_v38 = vrot.slane %v1085_v19, 4  ;;  %v1145_v2 = vunpack.c.l.s4 %v1575_v60  ;;  %v1078_v60 = vrot.slane %v2014_v5, 3 }
  0xb6   :  { %1334 = vmatmul.msk.f32.gmra.mxu2 %vm114_vm0, %v1755_v35 }
  0xb7   :  { %v1914_v23 = vpop.f32.mrf.mxu1  ;;  %v2031_v39 = vpop.f32.mrf.mxu2  ;;  %v1117_v54 = vsel %vm1116_vm6, %v1115_v38, %v1083_v44  ;;  %v2046_v15 = vunpack.c.0.s8 %v1145_v2  ;;  %v1076_v2 = vrot.slane %v2014_v5, 1 }
  0xb8   :  { %v2066_v44 = vpop.f32.mrf.mxu0 }
  0xba   :  { %v433_v47 = vpop.permute.xlu0 %432 }
  0xbb   :  { %v1976_v50 = vsel %vm379_vm2, %v433_v47, 0.0  ;;  %v2034_v47 = vunpack.c.0.s8 %v1119_v32 }
  0xbc   :  { %1340 = vmatmul.msk.f32.gmra.mxu1 %vm530_vm3, %v1908_v22  ;;  %1349 = vmatmul.msk.f32.gmra.mxu3 %vm530_vm3, %v1906_v21 }
  0xbd   :  { %1374 = vmatmul.msk.f32.gmra.mxu0 %vm530_vm3, %v1908_v22  ;;  %v1121_v3 = vperm.slane %v1117_v54, %v2034_v47  ;;  %v1127_v8 = vperm.slane %v1123_v52, %v2034_v47  ;;  %v1133_v9 = vperm.slane %v1129_v55, %v2034_v47 }
  0xbe   :  { %1335 = vmatmul.msk.f32.gmra.mxu2 %vm114_vm0, %v1771_v37  ;;  %v1082_v37 = vrot.slane %v2014_v5, 7 }
  0xbf   :  { %v1934_v30 = vpop.f32.mrf.mxu1  ;;  %v1140_v16 = vrot.slane %v1127_v8, 4  ;;  %v1142_v19 = vrot.slane %v1121_v3, 4 }
  0xc1   :  { %v1141_v35 = vsel %vm1116_vm6, %v1140_v16, %v1121_v3  ;;  %v1143_v34 = vsel %vm1116_vm6, %v1127_v8, %v1142_v19  ;;  %v1077_v3 = vrot.slane %v2014_v5, 2  ;;  %v1094_v8 = vperm.slane %v1078_v60, 0 }
  0xc2   :  { %v2059_v26 = vperm.slane %v1141_v35, %v2046_v15  ;;  %v2072_v38 = vperm.slane %v1143_v34, %v2046_v15  ;;  %v1079_v35 = vrot.slane %v2014_v5, 4  ;;  %v2102_v34 = vpop.f32.mrf.mxu0 }
  0xc3   :  { %v1093_v16 = vperm.slane %v1077_v3, 0 }
  0xc4   :  { %1341 = vmatmul.msk.f32.gmra.mxu1 %vm530_vm3, %v1928_v29  ;;  %1350 = vmatmul.msk.f32.gmra.mxu3 %vm530_vm3, %v1926_v27  ;;  %v1166_v46 = vrot.slane %v2059_v26, 4 }
  0xc5   :  { %1375 = vmatmul.msk.f32.gmra.mxu0 %vm530_vm3, %v1928_v29 }
  0xc6   :  { %1336 = vmatmul.msk.f32.gmra.mxu2 %vm114_vm0, %v1793_v42 }
  0xc7   :  { %v1957_v43 = vpop.f32.mrf.mxu1 }
  0xcc   :  { %1342 = vmatmul.msk.f32.gmra.mxu1 %vm530_vm3, %v1951_v41  ;;  %1351 = vmatmul.msk.f32.gmra.mxu3 %vm530_vm3, %v1949_v40 }
  0xcd   :  { %1376 = vmatmul.msk.f32.gmra.mxu0 %vm530_vm3, %v1951_v41 }
  0xcf   :  { %v1985_v53 = vpop.f32.mrf.mxu1 }
  0xd4   :  { %1343 = vmatmul.msk.f32.gmra.mxu1 %vm530_vm3, %v1976_v50  ;;  %1352 = vmatmul.msk.f32.gmra.mxu3 %vm530_vm3, %v1974_v49 }
  0xd5   :  { %1377 = vmatmul.msk.f32.gmra.mxu0 %vm530_vm3, %v1976_v50 }
  0xd7   :  { %v2004_v1 = vpop.f32.mrf.mxu1 }
  0xdc   :  { %1353 = vmatmul.msk.f32.gmra.mxu3 %vm530_vm3, %v1998_v0  ;;  %1388 = vmatmul.msk.f32.vlgmr.msra.gmra.mxu1 %vm907_vm5, %v1993_v61 }
  0xdd   :  { %1378 = vmatmul.msk.f32.gmra.mxu0 %vm530_vm3, %v1824_v51 }
  0xdf   :  { %v2027_v24 = vpop.f32.mrf.mxu1 }
  0xe4   :  { %1355 = vmatmul.msk.f32.vlgmr.msrb.gmra.mxu3 %vm530_vm3, %v1872_v6  ;;  %1389 = vmatmul.msk.f32.gmra.mxu1 %vm907_vm5, %v2014_v5  ;;  %v1088_v6 = vperm.slane %v1073_v17, 0  ;;  %v1154_v17 = vrot.slane %v1133_v9, 4 }
  0xe5   :  { %1379 = vmatmul.msk.f32.gmra.mxu0 %vm530_vm3, %v1838_v56 }
  0xe6   :  { %v1135_v12 = vsel %vm1116_vm6, %v1134_v28, %v1088_v6  ;;  %v2076_v28 = vpop.f32.mrf.mxu2 }
  0xe7   :  { %v1139_v13 = vperm.slane %v1135_v12, %v2034_v47  ;;  %v2056_v25 = vpop.f32.mrf.mxu1  ;;  %v1081_v12 = vrot.slane %v2014_v5, 6 }
  0xe9   :  { %v1152_v18 = vrot.slane %v1139_v13, 4  ;;  %v1155_v20 = vsel %vm1116_vm6, %v1139_v13, %v1154_v17  ;;  %v1092_v13 = vperm.slane %v1076_v2, 0  ;;  %v1098_v17 = vperm.slane %v1082_v37, 0 }
  0xea   :  { %v1095_v2 = vperm.slane %v1079_v35, 0 }
  0xeb   :  { %v1153_v32 = vsel %vm1116_vm6, %v1152_v18, %v1133_v9  ;;  %v1080_v9 = vrot.slane %v2014_v5, 5  ;;  %v1178_v18 = vrot.slane %v1094_v8, 4 }
  0xec   :  { %1356 = vmatmul.msk.f32.gmra.mxu3 %vm530_vm3, %v1888_v11  ;;  %1392 = vmatmul.msk.f32.vlgmr.msrb.gmra.mxu1 %vm907_vm5, %v1993_v61  ;;  %v2064_v11 = vperm.slane %v1155_v20, %v2046_v15  ;;  %v2069_v6 = vperm.slane %v1153_v32, %v2046_v15  ;;  %v1097_v32 = vperm.slane %v1081_v12, 0 }
  0xed   :  { %1380 = vmatmul.msk.f32.gmra.mxu0 %vm530_vm3, %v1846_v59  ;;  %v1096_v20 = vperm.slane %v1080_v9, 0 }
  0xee   :  { %v1168_v52 = vrot.slane %v2064_v11, 4  ;;  %v1167_v54 = vsel %vm1116_vm6, %v2069_v6, %v1166_v46  ;;  %v891_v46 = vld [vmem:[#allocation5 + $0x20] sm:$0xff]  ;;  %v2107_v60 = vpop.f32.mrf.mxu2  ;;  %v1184_v37 = vrot.slane %v1097_v32, 4 }
  0xef   :  { %1230 = vrot.lane.b32.xlu1 %v1167_v54, %s1576_s1  ;;  %v2098_v19 = vpop.f32.mrf.mxu1  ;;  %v1179_v54 = vsel %vm1116_vm6, %v1178_v18, %v1092_v13  ;;  %951 = vmatpush.msra.mxu2 %v891_v46 }
  0xf0   :  { %v1169_v55 = vsel %vm1116_vm6, %v1168_v52, %v2072_v38  ;;  %2312 = vst [vmem:[#allocation15_spill] sm:$0xff] %v2098_v19  ;;  %v1172_v52 = vrot.slane %v1093_v16, 4  ;;  %v1183_v3 = vperm.slane %v1179_v54, %v2034_v47  ;;  %v1185_v42 = vsel %vm1116_vm6, %v1184_v37, %v1095_v2 }
  0xf1   :  { %1238 = vrot.lane.b32.xlu0 %v1169_v55, %s1577_s12  ;;  %v1190_v55 = vrot.slane %v1098_v17, 4  ;;  %v1189_v13 = vperm.slane %v1185_v42, %v2034_v47  ;;  %v1170_v54 = vrot.slane %v2072_v38, 4 }
  0xf2   :  { %v1196_v19 = vrot.slane %v1183_v3, 4 }
  0xf3   :  { %v1191_v9 = vsel %vm1116_vm6, %v1190_v55, %v1096_v20  ;;  %v1171_v55 = vsel %vm1116_vm6, %v2064_v11, %v1170_v54  ;;  %v1210_v38 = vrot.slane %v1189_v13, 4 }
  0xf4   :  { %1357 = vmatmul.msk.f32.gmra.mxu3 %vm530_vm3, %v1908_v22  ;;  %1393 = vmatmul.msk.f32.gmra.mxu1 %vm907_vm5, %v2014_v5  ;;  %v1091_v22 = vperm.slane %v2014_v5, 0  ;;  %v1195_v16 = vperm.slane %v1191_v9, %v2034_v47 }
  0xf5   :  { %1381 = vmatmul.msk.f32.gmra.mxu0 %vm530_vm3, %v1867_v4 }
  0xf6   :  { %v1173_v8 = vsel %vm1116_vm6, %v1172_v52, %v1091_v22  ;;  %v1208_v18 = vrot.slane %v1195_v16, 4  ;;  %v888_v22 = vld [vmem:[#allocation5 + $0x8] sm:$0xff]  ;;  %v310_v52 = vpop.f32.mrf.mxu2 }
  0xf7   :  { %v1177_v12 = vperm.slane %v1173_v8, %v2034_v47  ;;  %952 = vmatpush.msra.mxu2 %v888_v22  ;;  %v2129_v46 = vpop.f32.mrf.mxu1  ;;  %v2133_v47 = vpop.f32.mrf.mxu0 }
  0xf8   :  { %v1209_v20 = vsel %vm1116_vm6, %v1208_v18, %v1189_v13  ;;  %1390 = vmatmul.msk.f32.vlgmr.msra.gmra.mxu2 %vm907_vm5, %v1993_v61 }
  0xf9   :  { %v1197_v17 = vsel %vm1116_vm6, %v1196_v19, %v1177_v12  ;;  %v2126_v32 = vperm.slane %v1209_v20, %v2046_v15  ;;  %v1198_v8 = vrot.slane %v1177_v12, 4 }
  0xfa   :  { %v2122_v35 = vperm.slane %v1197_v17, %v2046_v15 }
  0xfb   :  { %v1199_v42 = vsel %vm1116_vm6, %v1183_v3, %v1198_v8 }
  0xfc   :  { %1358 = vmatmul.msk.f32.gmra.mxu3 %vm530_vm3, %v1928_v29  ;;  %v1222_v29 = vrot.slane %v2122_v35, 4  ;;  %v1207_v18 = vperm.slane %v1199_v42, %v2046_v15 }
  0xfd   :  { %1382 = vmatmul.msk.f32.gmra.mxu0 %vm530_vm3, %v1886_v10 }
  0xfe   :  { %v1223_v19 = vsel %vm1116_vm6, %v2126_v32, %v1222_v29  ;;  %v313_v2 = vpop.f32.mrf.mxu2  ;;  %v1226_v22 = vrot.slane %v1207_v18, 4 }
  0xff   :  { %1232 = vrot.lane.b32.xlu2 %v1223_v19, %s1576_s1  ;;  %v2147_v61 = vpop.f32.mrf.mxu1 }
 0x100   :  { %1391 = vmatmul.msk.f32.gmra.mxu2 %vm907_vm5, %v2014_v5 }
 0x104   :  { %1359 = vmatmul.msk.f32.gmra.mxu3 %vm530_vm3, %v1951_v41  ;;  %v2151_v41 = vpop.f32.mrf.mxu0 }
 0x105   :  { %1383 = vmatmul.msk.f32.gmra.mxu0 %vm530_vm3, %v1906_v21 }
 0x106   :  { %v316_v11 = vpop.f32.mrf.mxu2 }
 0x107   :  { %1246 = vrot.lane.b32.xlu2 %v1171_v55, %s1578_s13  ;;  %v2159_v5 = vpop.f32.mrf.mxu1 }
 0x108   :  { %2313 = vst [vmem:[#allocation16_spill] sm:$0xff] %v2159_v5 }
 0x10c   :  { %1360 = vmatmul.msk.f32.gmra.mxu3 %vm530_vm3, %v1976_v50  ;;  %v204_v37 = vpop.f32.mrf.mxu0  ;;  %v1211_v50 = vsel %vm1116_vm6, %v1195_v16, %v1210_v38 }
 0x10d   :  { %1384 = vmatmul.msk.f32.gmra.mxu0 %vm530_vm3, %v1926_v27  ;;  %v1219_v17 = vperm.slane %v1211_v50, %v2046_v15 }
 0x10e   :  { %v319_v12 = vpop.f32.mrf.mxu2 }
 0x10f   :  { %v1227_v16 = vsel %vm1116_vm6, %v1219_v17, %v1226_v22  ;;  %v2176_v13 = vpop.f32.mrf.mxu1 }
 0x110   :  { %1248 = vrot.lane.b32.xlu0 %v1227_v16, %s1578_s13  ;;  %2314 = vst [vmem:[#allocation17_spill] sm:$0xff] %v2176_v13 }
 0x114   :  { %1361 = vmatmul.msk.f32.gmra.mxu3 %vm530_vm3, %v1824_v51  ;;  %v1224_v51 = vrot.slane %v1219_v17, 4  ;;  %v207_v15 = vpop.f32.mrf.mxu0 }
 0x115   :  { %1385 = vmatmul.msk.f32.gmra.mxu0 %vm530_vm3, %v1949_v40 }
 0x116   :  { %v1225_v20 = vsel %vm1116_vm6, %v1224_v51, %v1207_v18  ;;  %v322_v29 = vpop.f32.mrf.mxu2 }
 0x117   :  { %v2161_v9 = vpop.f32.mrf.mxu3  ;;  %1240 = vrot.lane.b32.xlu1 %v1225_v20, %s1577_s12 }
 0x11c   :  { %1362 = vmatmul.msk.f32.gmra.mxu3 %vm530_vm3, %v1838_v56 }
 0x11d   :  { %1386 = vmatmul.msk.f32.gmra.mxu0 %vm530_vm3, %v1974_v49 }
 0x11e   :  { %v325_v42 = vpop.f32.mrf.mxu2 }
 0x11f   :  { %v2174_v3 = vpop.f32.mrf.mxu3 }
 0x124   :  { %1363 = vmatmul.msk.f32.gmra.mxu3 %vm530_vm3, %v1846_v59 }
 0x125   :  { %1387 = vmatmul.msk.f32.gmra.mxu0 %vm530_vm3, %v1998_v0 }
 0x127   :  { %v627_v56 = vpop.f32.mrf.mxu3 }
 0x128   :  { %v805_v19 = vmul.f32 %v627_v56, %v204_v37 }
 0x129   :  { %v603_v54 = vpop.f32.mrf.mxu1 }
 0x12a   :  { %v733_v55 = vpop.f32.mrf.mxu0 }
 0x12b   :  { %v783_v51 = vmul.f32 %v733_v55, %v310_v52 }
 0x12c   :  { %1364 = vmatmul.msk.f32.gmra.mxu3 %vm530_vm3, %v1867_v4  ;;  %v328_v4 = vpop.f32.mrf.mxu2 }
 0x12f   :  { %v630_v38 = vpop.f32.mrf.mxu3 }
 0x130   :  { %v808_v8 = vmul.f32 %v630_v38, %v207_v15 }
 0x131   :  { %v606_v50 = vpop.f32.mrf.mxu1 }
 0x132   :  { %v850_v17 = vadd.f32 %v808_v8, %v805_v19  ;;  %v736_v18 = vpop.f32.mrf.mxu0 }
 0x133   :  { %v786_v22 = vmul.f32 %v736_v18, %v313_v2 }
 0x134   :  { %1365 = vmatmul.msk.f32.gmra.mxu3 %vm530_vm3, %v1886_v10  ;;  %v331_v8 = vpop.f32.mrf.mxu2 }
 0x135   :  { %v843_v59 = vadd.f32 %v786_v22, %v783_v51 }
 0x137   :  { %v633_v20 = vpop.f32.mrf.mxu3 }
 0x138   :  { %v811_v37 = vmul.f32 %v633_v20, %v1967_v45 }
 0x139   :  { %v609_v16 = vpop.f32.mrf.mxu1 }
 0x13a   :  { %v851_v56 = vadd.f32 %v850_v17, %v811_v37  ;;  %v739_v13 = vpop.f32.mrf.mxu0 }
 0x13b   :  { %v789_v5 = vmul.f32 %v739_v13, %v316_v11  ;;  %v784_v11 = vmul.f32 %v606_v50, %v1969_v48 }
 0x13c   :  { %1366 = vmatmul.msk.f32.gmra.mxu3 %vm530_vm3, %v1906_v21  ;;  %v781_v21 = vmul.f32 %v603_v54, %v1944_v36 }
 0x13d   :  { %v844_v15 = vadd.f32 %v843_v59, %v789_v5  ;;  %v787_v5 = vmul.f32 %v609_v16, %v1995_v63 }
 0x13e   :  { %v829_v59 = vadd.f32 %v784_v11, %v781_v21 }
 0x13f   :  { %v636_v19 = vpop.f32.mrf.mxu3 }
 0x140   :  { %v814_v52 = vmul.f32 %v636_v19, %v1989_v57  ;;  %v830_v20 = vadd.f32 %v829_v59, %v787_v5 }
 0x141   :  { %v612_v2 = vpop.f32.mrf.mxu1 }
 0x142   :  { %v852_v55 = vadd.f32 %v851_v56, %v814_v52  ;;  %v742_v38 = vpop.f32.mrf.mxu0 }
 0x143   :  { %v792_v10 = vmul.f32 %v742_v38, %v319_v12  ;;  %v790_v12 = vmul.f32 %v612_v2, %v2025_v33 }
 0x144   :  { %1367 = vmatmul.msk.f32.gmra.mxu3 %vm530_vm3, %v1926_v27 }
 0x145   :  { %v845_v45 = vadd.f32 %v844_v15, %v792_v10  ;;  %v831_v37 = vadd.f32 %v830_v20, %v790_v12  ;;  %v2209_v15 = vld [vmem:[#allocation7] sm:$0x7] }
 0x146   :  { %v901_v2 = vperm.slane %v2209_v15, 0 }
 0x147   :  { %v639_v17 = vpop.f32.mrf.mxu3 }
 0x148   :  { %v817_v13 = vmul.f32 %v639_v17, %v2008_v31  ;;  %v2200_v31 = vpop.f32.mrf.mxu2 }
 0x149   :  { %v615_v18 = vpop.f32.mrf.mxu1 }
 0x14a   :  { %v853_v57 = vadd.f32 %v852_v55, %v817_v13  ;;  %v745_v51 = vpop.f32.mrf.mxu0  ;;  %v793_v48 = vmul.f32 %v615_v18, %v2066_v44  ;;  %v799_v44 = vmul.f32 %v2161_v9, %v2133_v47  ;;  %v1220_v47 = vrot.slane %v2126_v32, 4 }
 0x14b   :  { %v795_v22 = vmul.f32 %v745_v51, %v322_v29 }
 0x14c   :  { %1368 = vmatmul.msk.f32.gmra.mxu3 %vm530_vm3, %v1949_v40  ;;  %v832_v54 = vadd.f32 %v831_v37, %v793_v48  ;;  %v2207_v40 = vld [vmem:[%s2308_s6] sm:$0x7]  ;;  %v1221_v5 = vsel %vm1116_vm6, %v1220_v47, %v2122_v35  ;;  %s1579_s6 = smov [#allocation10]  }
 0x14d   :  { %v846_v27 = vadd.f32 %v845_v45, %v795_v22  ;;  %v875_v47 = vperm.slane %v2207_v40, 2  ;;  %s1272_s16 = sshll.u32 %s1579_s6, 4  ;;  %s1273_s16 = int_to_ptr.vmem [resolvable:$true] %s1272_s16 }
 0x14f   :  { %v642_v50 = vpop.f32.mrf.mxu3 }
 0x150   :  { %v820_v36 = vmul.f32 %v642_v50, %v2031_v39  ;;  %v337_v17 = vpop.f32.mrf.mxu2 }
 0x151   :  { %v618_v63 = vpop.f32.mrf.mxu1 }
 0x152   :  { %v854_v16 = vadd.f32 %v853_v57, %v820_v36  ;;  %v796_v29 = vmul.f32 %v618_v63, %v2102_v34  ;;  %v748_v56 = vpop.f32.mrf.mxu0  ;;  %v802_v34 = vmul.f32 %v2174_v3, %v2151_v41 }
 0x153   :  { %v798_v33 = vmul.f32 %v748_v56, %v325_v42  ;;  %v873_v42 = vperm.slane %v2207_v40, 0 }
 0x154   :  { %v833_v19 = vadd.f32 %v832_v54, %v796_v29  ;;  %1369 = vmatmul.msk.f32.gmra.mxu3 %vm530_vm3, %v1974_v49 }
 0x155   :  { %v847_v39 = vadd.f32 %v846_v27, %v798_v33 }
 0x156   :  { %v834_v52 = vadd.f32 %v833_v19, %v799_v44  ;;  %v903_v19 = vperm.slane %v2209_v15, 2 }
 0x157   :  { %v645_v55 = vpop.f32.mrf.mxu3 }
 0x158   :  { %v823_v38 = vmul.f32 %v645_v55, %v2076_v28  ;;  %v835_v10 = vadd.f32 %v834_v52, %v802_v34  ;;  %v340_v20 = vpop.f32.mrf.mxu2 }
 0x159   :  { %v931_v45 = vpop.f32.mrf.mxu1  ;;  %v1233_v28 = vpop.permute.xlu2 %1232 }
 0x15a   :  { %v855_v9 = vadd.f32 %v854_v16, %v823_v38  ;;  %v751_v11 = vpop.f32.mrf.mxu0  ;;  %v879_v49 = vadd.f32 %v873_v42, %v835_v10  ;;  %v932_v13 = vadd.f32 %v931_v45, %v901_v2  ;;  %v2226_v51 = vsel %vm907_vm5, %v1221_v5, %v1233_v28 }
 0x15b   :  { %v801_v18 = vmul.f32 %v751_v11, %v328_v4  ;;  %v1164_v10 = vrot.slane %v2069_v6, 4 }
 0x15c   :  { %v983_v21 = vadd.f32 %v932_v13, %v879_v49  ;;  %1370 = vmatmul.msk.f32.gmra.mxu3 %vm530_vm3, %v1998_v0 }
 0x15d   :  { %v848_v41 = vadd.f32 %v847_v39, %v801_v18 }
 0x15e   :  { %v1394_v3 = vmul.f32 -1.442695, %v983_v21 }
 0x15f   :  { %v648_v57 = vpop.f32.mrf.mxu3 }
 0x160   :  { %1418 = vpow2.f32 %v1394_v3  ;;  %v826_v32 = vmul.f32 %v648_v57, %v2107_v60  ;;  %v2231_v16 = vpop.f32.mrf.mxu2 }
 0x161   :  { %v934_v22 = vpop.f32.mrf.mxu1  ;;  %v1231_v3 = vpop.permute.xlu1 %1230 }
 0x162   :  { %v856_v59 = vadd.f32 %v855_v9, %v826_v32  ;;  %v754_v4 = vpop.f32.mrf.mxu0  ;;  %v935_v12 = vadd.f32 %v934_v22, %v901_v2 }
 0x163   :  { %v804_v27 = vmul.f32 %v754_v4, %v331_v8 }
 0x164   :  { %v882_v0 = vadd.f32 %v873_v42, %v856_v59 }
 0x165   :  { %v849_v48 = vadd.f32 %v848_v41, %v804_v27  ;;  %v1165_v41 = vsel %vm1116_vm6, %v1164_v10, %v2059_v26 }
 0x166   :  { %v1419_v50 = vpop.eup %1418  ;;  %v984_v37 = vadd.f32 %v935_v12, %v882_v0  ;;  %v1252_v59 = vsel %vm907_vm5, %v1165_v41, %v1231_v3  ;;  %v1239_v12 = vpop.permute.xlu0 %1238 }
 0x167   :  { %v991_v36 = vadd.f32 1.0, %v1419_v50  ;;  %v2229_v35 = vpop.f32.mrf.mxu3  ;;  %v881_v6 = vadd.f32 %v875_v47, %v849_v48  ;;  %v1255_v48 = vsel %vm1254_vm9, %v1252_v59, %v1239_v12 }
 0x168   :  { %v1395_v63 = vmul.f32 -1.442695, %v984_v37  ;;  %v346_v18 = vpop.f32.mrf.mxu2 }
 0x169   :  { %1420 = vrcp.f32 %v991_v36  ;;  %v977_v42 = vpop.f32.mrf.mxu1  ;;  %v1004_v2 = vand.u32 2147483648, %v991_v36  ;;  %v1002_v38 = vand.u32 2147483647, %v991_v36  ;;  %vm998_vm3 = vweird.f32 %v991_v36 }
 0x16a   :  { %1422 = vpow2.f32 %v1395_v63  ;;  %v757_v54 = vpop.f32.mrf.mxu0  ;;  %v978_v9 = vadd.f32 %v977_v42, %v903_v19  ;;  %v1247_v63 = vpop.permute.xlu2 %1246 }
 0x16b   :  { %v807_v34 = vmul.f32 %v757_v54, %v2200_v31  ;;  %v1005_v13 = vor.u32 1.1754944e-38, %v1004_v2  ;;  %vm1003_vm8 = vcmp.eq.f32.partialorder %v1002_v38, 8.507059e+37 }
 0x16f   :  { %v1421_v60 = vpop.eup %1420  ;;  %v2233_v29 = vpop.f32.mrf.mxu3 }
 0x170   :  { %v1423_v56 = vpop.eup %1422  ;;  %v994_v33 = vmul.f32 %v1421_v60, %v991_v36  ;;  %vm999_vm0 = vweird.f32 %v1421_v60 }
 0x171   :  { %v992_v8 = vadd.f32 1.0, %v1423_v56  ;;  %vm1000_vm7 = vmor %vm998_vm3, %vm999_vm0  ;;  %v980_v0 = vpop.f32.mrf.mxu1  ;;  %v349_v56 = vpop.f32.mrf.mxu2 }
 0x172   :  { %v760_v44 = vpop.f32.mrf.mxu0  ;;  %v995_v39 = vsub.f32 1.0, %v994_v33  ;;  %v981_v54 = vadd.f32 %v980_v0, %v903_v19 }
 0x173   :  { %1424 = vrcp.f32 %v992_v8  ;;  %v810_v52 = vmul.f32 %v760_v44, %v337_v17  ;;  %v1019_v50 = vand.u32 2147483648, %v992_v8  ;;  %v1017_v26 = vand.u32 2147483647, %v992_v8 }
 0x174   :  { %v996_v55 = vmul.f32 %v1421_v60, %v995_v39  ;;  %vm1013_vm12 = vweird.f32 %v992_v8  ;;  %v2246_v39 = vsel %vm1257_vm11, %v1255_v48, %v1247_v63 }
 0x175   :  { %v864_v45 = vadd.f32 %v810_v52, %v807_v34  ;;  %vm1018_vm14 = vcmp.eq.f32.partialorder %v1017_v26, 8.507059e+37  ;;  %v874_v26 = vperm.slane %v2207_v40, 1 }
 0x176   :  { %v997_v11 = vadd.f32 %v1421_v60, %v996_v55 }
 0x177   :  { %v674_v49 = vpop.f32.mrf.mxu3 }
 0x178   :  { %v1001_v21 = vsel %vm1000_vm7, %v1421_v60, %v997_v11  ;;  %v1020_v60 = vor.u32 1.1754944e-38, %v1019_v50 }
 0x179   :  { %v1425_v31 = vpop.eup %1424  ;;  %v1006_v17 = vsel %vm1003_vm8, %v1005_v13, %v1001_v21 }
 0x17a   :  { %v1063_v5 = vmul.f32 %v1006_v17, %v978_v9  ;;  %v763_v28 = vpop.f32.mrf.mxu0  ;;  %v1009_v57 = vmul.f32 %v1425_v31, %v992_v8  ;;  %vm1014_vm10 = vweird.f32 %v1425_v31  ;;  %v785_v17 = vmul.f32 %v2233_v29, %v1852_v62 }
 0x17b   :  { %v813_v32 = vmul.f32 %v763_v28, %v340_v20  ;;  %vm1015_vm13 = vmor %vm1013_vm12, %vm1014_vm10 }
 0x17c   :  { %v1065_v22 = vadd.f32 %v1063_v5, %v881_v6  ;;  %v1010_v4 = vsub.f32 1.0, %v1009_v57  ;;  %v782_v6 = vmul.f32 %v2229_v35, %v1842_v58 }
 0x17d   :  { %v865_v27 = vadd.f32 %v864_v45, %v813_v32  ;;  %v352_v45 = vpop.f32.mrf.mxu2 }
 0x17e   :  { %1426 = vtanh.f32 %v1065_v22  ;;  %v1011_v37 = vmul.f32 %v1425_v31, %v1010_v4  ;;  %v836_v57 = vadd.f32 %v785_v17, %v782_v6 }
 0x17f   :  { %v677_v36 = vpop.f32.mrf.mxu3 }
 0x180   :  { %v1012_v20 = vadd.f32 %v1425_v31, %v1011_v37  ;;  %v791_v32 = vmul.f32 %v677_v36, %v1900_v14 }
 0x182   :  { %v766_v33 = vpop.f32.mrf.mxu0  ;;  %v1016_v44 = vsel %vm1015_vm13, %v1425_v31, %v1012_v20  ;;  %v1249_v31 = vpop.permute.xlu0 %1248 }
 0x183   :  { %v816_v34 = vmul.f32 %v766_v33, %v2231_v16  ;;  %v1021_v52 = vsel %vm1018_vm14, %v1020_v60, %v1016_v44 }
 0x184   :  { %v2249_v42 = vpop.eup %1426  ;;  %v1064_v2 = vmul.f32 %v1021_v52, %v981_v54 }
 0x185   :  { %v866_v55 = vadd.f32 %v865_v27, %v816_v34  ;;  %v1260_v19 = vsub.f32 %v2246_v39, %v2249_v42  ;;  %v355_v28 = vpop.f32.mrf.mxu2 }
 0x187   :  { %v680_v8 = vpop.f32.mrf.mxu3 }
 0x188   :  { %v794_v59 = vmul.f32 %v680_v8, %v1914_v23 }
 0x189   :  { %v1241_v13 = vpop.permute.xlu1 %1240 }
 0x18a   :  { %v769_v38 = vpop.f32.mrf.mxu0  ;;  %v1256_v21 = vsel %vm1254_vm9, %v2226_v51, %v1241_v13 }
 0x18b   :  { %v819_v10 = vmul.f32 %v769_v38, %v346_v18  ;;  %v2256_v16 = vsel %vm1257_vm11, %v1256_v21, %v1249_v31  ;;  %v788_v18 = vmul.f32 %v674_v49, %v1878_v7  ;;  %v902_v7 = vperm.slane %v2209_v15, 1 }
 0x18d   :  { %v867_v9 = vadd.f32 %v866_v55, %v819_v10  ;;  %v837_v22 = vadd.f32 %v836_v57, %v788_v18  ;;  %v954_v50 = vpop.f32.mrf.mxu2 }
 0x18f   :  { %v683_v11 = vpop.f32.mrf.mxu3  ;;  %v838_v4 = vadd.f32 %v837_v22, %v791_v32  ;;  %v2315_v32 = vld [vmem:[#allocation15_spill] sm:$0xff] }
 0x190   :  { %v797_v12 = vmul.f32 %v683_v11, %v1934_v30  ;;  %v955_v30 = vadd.f32 %v954_v50, %v902_v7 }
 0x191   :  { %v839_v27 = vadd.f32 %v838_v4, %v794_v59 }
 0x192   :  { %v772_v41 = vpop.f32.mrf.mxu0 }
 0x193   :  { %v822_v3 = vmul.f32 %v772_v41, %v349_v56  ;;  %v840_v35 = vadd.f32 %v839_v27, %v797_v12  ;;  %v2316_v12 = vld [vmem:[#allocation16_spill] sm:$0xff] }
 0x195   :  { %v868_v5 = vadd.f32 %v867_v9, %v822_v3 }
 0x197   :  { %v686_v51 = vpop.f32.mrf.mxu3 }
 0x198   :  { %v800_v0 = vmul.f32 %v686_v51, %v1957_v43 }
 0x19a   :  { %v775_v62 = vpop.f32.mrf.mxu0  ;;  %v841_v37 = vadd.f32 %v840_v35, %v800_v0 }
 0x19b   :  { %v825_v29 = vmul.f32 %v775_v62, %v352_v45 }
 0x19d   :  { %v869_v58 = vadd.f32 %v868_v5, %v825_v29 }
 0x19f   :  { %v689_v49 = vpop.f32.mrf.mxu3 }
 0x1a0   :  { %v803_v14 = vmul.f32 %v689_v49, %v1985_v53 }
 0x1a2   :  { %v842_v23 = vadd.f32 %v841_v37, %v803_v14  ;;  %v778_v36 = vpop.f32.mrf.mxu0 }
 0x1a3   :  { %v828_v48 = vmul.f32 %v778_v36, %v355_v28 }
 0x1a4   :  { %v880_v63 = vadd.f32 %v874_v26, %v842_v23 }
 0x1a5   :  { %v870_v54 = vadd.f32 %v869_v58, %v828_v48 }
 0x1a6   :  { %v1023_v43 = vadd.f32 %v955_v30, %v880_v63 }
 0x1a7   :  { %v884_v20 = vadd.f32 %v875_v47, %v870_v54  ;;  %v692_v60 = vpop.f32.mrf.mxu3 }
 0x1a8   :  { %v1396_v56 = vmul.f32 -1.442695, %v1023_v43  ;;  %v806_v5 = vmul.f32 %v692_v60, %v2004_v1  ;;  %v2317_v1 = vld [vmem:[#allocation17_spill] sm:$0xff] }
 0x1a9   :  { %v1066_v33 = vadd.f32 %v1064_v2, %v884_v20 }
 0x1aa   :  { %1428 = vpow2.f32 %v1396_v56 }
 0x1ab   :  { %1430 = vtanh.f32 %v1066_v33 }
 0x1af   :  { %v695_v53 = vpop.f32.mrf.mxu3 }
 0x1b0   :  { %v1429_v44 = vpop.eup %1428  ;;  %v809_v18 = vmul.f32 %v695_v53, %v2027_v24  ;;  %v957_v24 = vpop.f32.mrf.mxu2 }
 0x1b1   :  { %v2274_v34 = vpop.eup %1430  ;;  %v1031_v52 = vadd.f32 1.0, %v1429_v44  ;;  %v958_v35 = vadd.f32 %v957_v24, %v902_v7 }
 0x1b2   :  { %v1261_v55 = vsub.f32 %v2256_v16, %v2274_v34  ;;  %v857_v57 = vadd.f32 %v809_v18, %v806_v5 }
 0x1b3   :  { %1432 = vrcp.f32 %v1031_v52  ;;  %v1044_v40 = vand.u32 2147483648, %v1031_v52  ;;  %v1042_v9 = vand.u32 2147483647, %v1031_v52  ;;  %vm1038_vm1 = vweird.f32 %v1031_v52 }
 0x1b5   :  { %v1045_v13 = vor.u32 1.1754944e-38, %v1044_v40  ;;  %vm1043_vm4 = vcmp.eq.f32.partialorder %v1042_v9, 8.507059e+37 }
 0x1b7   :  { %v698_v8 = vpop.f32.mrf.mxu3 }
 0x1b8   :  { %v812_v28 = vmul.f32 %v698_v8, %v2056_v25 }
 0x1b9   :  { %v1433_v38 = vpop.eup %1432 }
 0x1ba   :  { %v1034_v10 = vmul.f32 %v1433_v38, %v1031_v52  ;;  %vm1039_vm15 = vweird.f32 %v1433_v38  ;;  %v858_v59 = vadd.f32 %v857_v57, %v812_v28 }
 0x1bb   :  { %vm1040_vm2 = vmor %vm1038_vm1, %vm1039_vm15 }
 0x1bc   :  { %v1035_v45 = vsub.f32 1.0, %v1034_v10 }
 0x1be   :  { %v1036_v47 = vmul.f32 %v1433_v38, %v1035_v45 }
 0x1bf   :  { %v701_v2 = vpop.f32.mrf.mxu3 }
 0x1c0   :  { %v1037_v11 = vadd.f32 %v1433_v38, %v1036_v47  ;;  %v815_v51 = vmul.f32 %v701_v2, %v2315_v32 }
 0x1c2   :  { %v1041_v21 = vsel %vm1040_vm2, %v1433_v38, %v1037_v11  ;;  %v859_v39 = vadd.f32 %v858_v59, %v815_v51 }
 0x1c3   :  { %v1046_v31 = vsel %vm1043_vm4, %v1045_v13, %v1041_v21 }
 0x1c4   :  { %v1262_v17 = vmul.f32 %v1260_v19, %v1046_v31 }
 0x1c6   :  { %v1264_v41 = vadd.f32 %v2249_v42, %v1262_v17 }
 0x1c7   :  { %v704_v3 = vpop.f32.mrf.mxu3 }
 0x1c8   :  { %1266 = vst [vmem:[#allocation10] sm:$0xff] %v1264_v41  ;;  %v818_v4 = vmul.f32 %v704_v3, %v2129_v46 }
 0x1ca   :  { %v860_v42 = vadd.f32 %v859_v39, %v818_v4 }
 0x1cf   :  { %v707_v6 = vpop.f32.mrf.mxu3 }
 0x1d0   :  { %v821_v19 = vmul.f32 %v707_v6, %v2147_v61 }
 0x1d2   :  { %v861_v29 = vadd.f32 %v860_v42, %v821_v19 }
 0x1d7   :  { %v710_v22 = vpop.f32.mrf.mxu3 }
 0x1d8   :  { %v824_v62 = vmul.f32 %v710_v22, %v2316_v12 }
 0x1da   :  { %v862_v0 = vadd.f32 %v861_v29, %v824_v62 }
 0x1df   :  { %v713_v27 = vpop.f32.mrf.mxu3 }
 0x1e0   :  { %v827_v58 = vmul.f32 %v713_v27, %v2317_v1 }
 0x1e2   :  { %v863_v25 = vadd.f32 %v862_v0, %v827_v58 }
 0x1e4   :  { %v883_v49 = vadd.f32 %v874_v26, %v863_v25 }
 0x1e6   :  { %v1024_v50 = vadd.f32 %v958_v35, %v883_v49 }
 0x1e8   :  { %v1397_v37 = vmul.f32 -1.442695, %v1024_v50 }
 0x1ea   :  { %1434 = vpow2.f32 %v1397_v37 }
 0x1f0   :  { %v1435_v46 = vpop.eup %1434 }
 0x1f1   :  { %v1032_v14 = vadd.f32 1.0, %v1435_v46 }
 0x1f3   :  { %1436 = vrcp.f32 %v1032_v14  ;;  %v1059_v30 = vand.u32 2147483648, %v1032_v14  ;;  %v1057_v63 = vand.u32 2147483647, %v1032_v14  ;;  %vm1053_vm6 = vweird.f32 %v1032_v14 }
 0x1f5   :  { %v1060_v43 = vor.u32 1.1754944e-38, %v1059_v30  ;;  %vm1058_vm3 = vcmp.eq.f32.partialorder %v1057_v63, 8.507059e+37 }
 0x1f9   :  { %v1437_v61 = vpop.eup %1436 }
 0x1fa   :  { %v1049_v23 = vmul.f32 %v1437_v61, %v1032_v14  ;;  %vm1054_vm5 = vweird.f32 %v1437_v61 }
 0x1fb   :  { %vm1055_vm0 = vmor %vm1053_vm6, %vm1054_vm5 }
 0x1fc   :  { %v1050_v36 = vsub.f32 1.0, %v1049_v23 }
 0x1fe   :  { %v1051_v48 = vmul.f32 %v1437_v61, %v1050_v36 }
 0x200   :  { %v1052_v54 = vadd.f32 %v1437_v61, %v1051_v48 }
 0x202   :  { %v1056_v15 = vsel %vm1055_vm0, %v1437_v61, %v1052_v54 }
 0x203   :  { %v1061_v7 = vsel %vm1058_vm3, %v1060_v43, %v1056_v15 }
 0x204   :  { %v1263_v26 = vmul.f32 %v1261_v55, %v1061_v7 }
 0x206   :  { %v1265_v20 = vadd.f32 %v2274_v34, %v1263_v26 }
 0x208   :  { %1267 = vst [vmem:[#allocation10 + $0x8] sm:$0xff] %v1265_v20 }
 0x209   :  { %1280 = dma.vmem_to_hbm [thread:$0]  %s1273_s16, 256, %s1275_s18, [#allocation4], %s1570_s21, %s1570_s21, %s1571_s22  }
 0x20a   :  { %1564 = dma.done.wait [#allocation4], 256  }
 0x20b   :  { %1565 = vsyncadd [#allocation4], 4294967040 }
 0x20c   :  { %1285 = vsyncpa [#allocation3], 1 }
 0x20d   :  { %1286 = vsyncpa [#allocation6], 1 }
 0x20e   :  { %1287 = vsyncpa [#allocation9], 1 }
 0x20f   :  { %1288 = vsyncpa [#allocation4], 1 }

</bundles_post_ra>
